<compile_context>
chip_gen: v7x
topology: tpu7x:2x2x1
jax: 0.10.0
libtpu: 0.0.40
codegen_flags: <defaults>
</compile_context>

<pallas_src>
import functools

import jax
import jax.numpy as jnp
from jax.experimental import pallas as pl
from jax.experimental.pallas import tpu as pltpu


def _round_up(v, m):
    return (v + m - 1) // m * m


# ---------------------------------------------------------------------------
# Kernel 1: 3x3 conv (in-VMEM shifted-slab im2col) + bias, bf16 MXU operands,
#           f32 accumulation, plus per-(batch, channel) sum / sum-of-squares.
# ---------------------------------------------------------------------------
def _conv3x3_bias_stats_kernel(x_ref, w_ref, b_ref, y_ref, stats_ref, xpad_ref,
                               *, width, left_pad):
    cin = x_ref.shape[1]
    hw = x_ref.shape[2]
    cout = w_ref.shape[1]

    # Zero-padded f32 copy of this image's flattened (Cin, H*W) slab in VMEM.
    # Borders are re-zeroed every step (scratch is per-core and persistent).
    zeros_border = jnp.zeros((cin, left_pad), jnp.float32)
    xpad_ref[:, :left_pad] = zeros_border
    xpad_ref[:, left_pad + hw:] = zeros_border
    xpad_ref[:, left_pad:left_pad + hw] = x_ref[0].astype(jnp.float32)

    # Column index of every flattened output position (for left/right edge
    # zero-padding of the dx=0 / dx=2 taps).
    col = jax.lax.broadcasted_iota(jnp.int32, (1, hw), 1) % width
    left_edge = col == 0
    right_edge = col == width - 1

    acc = jnp.zeros((cout, hw), jnp.float32)
    for dy in range(3):
        for dx in range(3):
            # slab[k] = x_flat[k + (dy-1)*W + (dx-1)]  (zero outside the image)
            off = left_pad + (dy - 1) * width + (dx - 1)
            slab = xpad_ref[:, off:off + hw]              # (cin, hw) f32
            if dx == 0:
                slab = jnp.where(left_edge, 0.0, slab)
            elif dx == 2:
                slab = jnp.where(right_edge, 0.0, slab)
            acc = acc + jnp.dot(w_ref[dy * 3 + dx], slab.astype(jnp.bfloat16),
                                preferred_element_type=jnp.float32)

    yb = acc + b_ref[...]                                  # (cout, hw) f32
    y_ref[0] = yb.astype(y_ref.dtype)                      # bf16 intermediate
    # Per-batch partial BN statistics (combined across N in the wrapper).
    stats_ref[0, 0] = jnp.sum(yb, axis=1, keepdims=True)
    stats_ref[0, 1] = jnp.sum(yb * yb, axis=1, keepdims=True)


# ---------------------------------------------------------------------------
# Kernel 2: fused BatchNorm affine + ReLU (elementwise, lane-dense blocks).
# ---------------------------------------------------------------------------
def _bn_relu_kernel(y_ref, scale_ref, shift_ref, o_ref):
    y = y_ref[0].astype(jnp.float32)
    o_ref[0] = jnp.maximum(y * scale_ref[...] + shift_ref[...],
                           0.0).astype(o_ref.dtype)


# ---------------------------------------------------------------------------
# pallas_call wrappers
# ---------------------------------------------------------------------------
def _conv_bias_stats(x_flat, w_taps, bias, *, width):
    n, cin_p, hw = x_flat.shape
    cout_p = w_taps.shape[1]
    left_pad = _round_up(width + 1, 128)          # halo for +-(W+1) lane shifts
    pad_w = hw + 2 * left_pad
    kernel = functools.partial(_conv3x3_bias_stats_kernel,
                               width=width, left_pad=left_pad)
    return pl.pallas_call(
        kernel,
        grid=(n,),
        in_specs=[
            pl.BlockSpec((1, cin_p, hw), lambda i: (i, 0, 0)),
            pl.BlockSpec((9, cout_p, cin_p), lambda i: (0, 0, 0)),
            pl.BlockSpec((cout_p, 1), lambda i: (0, 0)),
        ],
        out_specs=[
            pl.BlockSpec((1, cout_p, hw), lambda i: (i, 0, 0)),
            pl.BlockSpec((1, 2, cout_p, 1), lambda i: (i, 0, 0, 0)),
        ],
        out_shape=(
            jax.ShapeDtypeStruct((n, cout_p, hw), jnp.bfloat16),
            jax.ShapeDtypeStruct((n, 2, cout_p, 1), jnp.float32),
        ),
        scratch_shapes=[pltpu.VMEM((cin_p, pad_w), jnp.float32)],
        compiler_params=pltpu.CompilerParams(
            dimension_semantics=("parallel",),      # no cross-step state -> megacore OK
            vmem_limit_bytes=32 * 1024 * 1024),
    )(x_flat, w_taps, bias)


def _bn_relu(y, scale, shift, out_dtype):
    n, cout_p, hw = y.shape
    # When the output dtype matches y (bf16 inter-stage activation), overwrite
    # y in place to avoid a second HBM allocation.
    alias = {0: 0} if jnp.dtype(out_dtype) == y.dtype else {}
    return pl.pallas_call(
        _bn_relu_kernel,
        grid=(n,),
        in_specs=[
            pl.BlockSpec((1, cout_p, hw), lambda i: (i, 0, 0)),
            pl.BlockSpec((cout_p, 1), lambda i: (0, 0)),
            pl.BlockSpec((cout_p, 1), lambda i: (0, 0)),
        ],
        out_specs=pl.BlockSpec((1, cout_p, hw), lambda i: (i, 0, 0)),
        out_shape=jax.ShapeDtypeStruct((n, cout_p, hw), out_dtype),
        input_output_aliases=alias,
        compiler_params=pltpu.CompilerParams(
            dimension_semantics=("parallel",),
            vmem_limit_bytes=32 * 1024 * 1024),
    )(y, scale, shift)


# ---------------------------------------------------------------------------
# Layout glue (tiny, weight-sized): tap-major weight flattening + padding.
# ---------------------------------------------------------------------------
def _prep_weight(w_oihw, cout_p, cin_p):
    cout, cin = w_oihw.shape[0], w_oihw.shape[1]
    w_taps = jnp.transpose(w_oihw, (2, 3, 0, 1)).reshape(9, cout, cin)
    w_taps = jnp.pad(w_taps, ((0, 0), (0, cout_p - cout), (0, cin_p - cin)))
    return w_taps.astype(jnp.bfloat16)


# ---------------------------------------------------------------------------
# double_conv forward
# ---------------------------------------------------------------------------
@jax.jit
def double_conv(x, params):
    n, cin, h, w = x.shape
    hw = h * w
    eps = 1e-5                       # PyTorch BatchNorm2d default
    count = float(n * hw)

    def stage(h_flat, w_oihw, b, gamma, beta, out_dtype):
        cin_p = h_flat.shape[1]
        cout = w_oihw.shape[0]
        cout_p = _round_up(cout, 8)
        w_taps = _prep_weight(w_oihw, cout_p, cin_p)
        b_p = jnp.pad(b, (0, cout_p - cout)).astype(jnp.float32).reshape(cout_p, 1)

        y, stats = _conv_bias_stats(h_flat, w_taps, b_p, width=w)

        # Combine per-batch partial stats (tiny) and build the fused BN affine.
        s_tot = jnp.sum(stats[:, 0, :, 0], axis=0)          # (cout_p,)
        q_tot = jnp.sum(stats[:, 1, :, 0], axis=0)
        mean = s_tot / count
        # E[y^2]-E[y]^2 can go slightly negative from rounding; clamp before eps.
        var = jnp.maximum(q_tot / count - mean * mean, 0.0)
        g_p = jnp.pad(gamma, (0, cout_p - cout))
        beta_p = jnp.pad(beta, (0, cout_p - cout))
        inv = g_p / jnp.sqrt(var + eps)
        scale = inv.reshape(cout_p, 1).astype(jnp.float32)
        shift = (beta_p - mean * inv).reshape(cout_p, 1).astype(jnp.float32)
        return _bn_relu(y, scale, shift, out_dtype), cout

    # Stage-1 input: flatten spatial, pad channels to a multiple of 8, bf16.
    cin_p = _round_up(cin, 8)
    x_flat = jnp.pad(x.reshape(n, cin, hw),
                     ((0, 0), (0, cin_p - cin), (0, 0))).astype(jnp.bfloat16)

    h1, _ = stage(x_flat, params["w1"], params["b1"],
                  params["g1"], params["beta1"], jnp.bfloat16)
    # h1 (bf16, channel-padded with exact zeros) feeds stage 2 directly.
    h2, c2 = stage(h1, params["w2"], params["b2"],
                   params["g2"], params["beta2"], jnp.float32)
    return h2[:, :c2, :].reshape(n, c2, h, w)


# ---------------------------------------------------------------------------
# Pure-JAX reference (correctness check only)
# ---------------------------------------------------------------------------
def reference_double_conv(x, params):
    eps = 1e-5

    def conv(inp, w, b):
        y = jax.lax.conv_general_dilated(
            inp, w, window_strides=(1, 1), padding="SAME",
            dimension_numbers=("NCHW", "OIHW", "NCHW"))
        return y + b[None, :, None, None]

    def bn_relu(y, gamma, beta):
        mean = jnp.mean(y, axis=(0, 2, 3), keepdims=True)
        var = jnp.var(y, axis=(0, 2, 3), keepdims=True)
        yn = (y - mean) / jnp.sqrt(var + eps)
        return jnp.maximum(
            yn * gamma[None, :, None, None] + beta[None, :, None, None], 0.0)

    h = bn_relu(conv(x, params["w1"], params["b1"]), params["g1"], params["beta1"])
    return bn_relu(conv(h, params["w2"], params["b2"]), params["g2"], params["beta2"])


# ---------------------------------------------------------------------------
if __name__ == "__main__":
    key = jax.random.PRNGKey(0)
    N, IN_CH, OUT_CH, H, W = 2, 4, 8, 16, 16
    ks = jax.random.split(key, 9)

    x = jax.random.normal(ks[0], (N, IN_CH, H, W), jnp.float32)
    params = {
        "w1": 0.2 * jax.random.normal(ks[1], (OUT_CH, IN_CH, 3, 3), jnp.float32),
        "b1": 0.1 * jax.random.normal(ks[2], (OUT_CH,), jnp.float32),
        "g1": 1.0 + 0.1 * jax.random.normal(ks[3], (OUT_CH,), jnp.float32),
        "beta1": 0.1 * jax.random.normal(ks[4], (OUT_CH,), jnp.float32),
        "w2": 0.2 * jax.random.normal(ks[5], (OUT_CH, OUT_CH, 3, 3), jnp.float32),
        "b2": 0.1 * jax.random.normal(ks[6], (OUT_CH,), jnp.float32),
        "g2": 1.0 + 0.1 * jax.random.normal(ks[7], (OUT_CH,), jnp.float32),
        "beta2": 0.1 * jax.random.normal(ks[8], (OUT_CH,), jnp.float32),
    }

    out = jax.block_until_ready(double_conv(x, params))
    ref = jax.block_until_ready(reference_double_conv(x, params))

    assert out.shape == (N, OUT_CH, H, W), out.shape
    # bf16 matmul operands + bf16 intermediate activations => a few % worst case.
    ok = bool(jnp.allclose(out, ref, rtol=6e-2, atol=6e-2))
    assert ok, f"max abs error vs reference: {float(jnp.max(jnp.abs(out - ref)))}"
    print("KERNEL_OK")
</pallas_src>

<mosaic_0001>
module attributes {stable_mosaic.version = 11 : i64} {
  func.func @_conv3x3_bias_stats_kernel(%arg0: i32, %arg1: memref<1x8x256xbf16, #tpu.memory_space<vmem>>, %arg2: memref<9x8x8xbf16, #tpu.memory_space<vmem>>, %arg3: memref<8x1xf32, #tpu.memory_space<vmem>>, %arg4: memref<1x8x256xbf16, #tpu.memory_space<vmem>>, %arg5: memref<1x2x8x1xf32, #tpu.memory_space<vmem>>, %arg6: memref<8x512xf32, #tpu.memory_space<vmem>>) attributes {dimension_semantics = [#tpu.dimension_semantics<parallel>], iteration_bounds = array<i64: 2>, scalar_prefetch = 0 : i64, scratch_operands = 1 : i64, tpu.core_type = #tpu.core_type<tc>, window_params = [{transform_indices = @transform_0, window_bounds = array<i64: 1, 8, 256>}, {pipeline_mode = #tpu.pipeline_mode<synchronous>, transform_indices = @transform_1, window_bounds = array<i64: 9, 8, 8>}, {pipeline_mode = #tpu.pipeline_mode<synchronous>, transform_indices = @transform_2, window_bounds = array<i64: 8, 1>}, {transform_indices = @transform_3, window_bounds = array<i64: 1, 8, 256>}, {transform_indices = @transform_4, window_bounds = array<i64: 1, 2, 8, 1>}]} {
    %cst = arith.constant 0.000000e+00 : f32
    %0 = vector.broadcast %cst : f32 to vector<8x128xf32>
    %c0 = arith.constant 0 : index
    %c0_0 = arith.constant 0 : index
    %1 = vector.load %arg6[%c0, %c0_0] : memref<8x512xf32, #tpu.memory_space<vmem>>, vector<8x128xf32>
    tpu.vector_store %arg6[%c0, %c0_0], %0 {strides = array<i32>} : memref<8x512xf32, #tpu.memory_space<vmem>>, vector<8x128xf32>,
    %c0_1 = arith.constant 0 : index
    %c384 = arith.constant 384 : index
    %2 = vector.load %arg6[%c0_1, %c384] : memref<8x512xf32, #tpu.memory_space<vmem>>, vector<8x128xf32>
    tpu.vector_store %arg6[%c0_1, %c384], %0 {strides = array<i32>} : memref<8x512xf32, #tpu.memory_space<vmem>>, vector<8x128xf32>,
    %c0_2 = arith.constant 0 : index
    %c0_3 = arith.constant 0 : index
    %c0_4 = arith.constant 0 : index
    %3 = vector.load %arg1[%c0_2, %c0_3, %c0_4] : memref<1x8x256xbf16, #tpu.memory_space<vmem>>, vector<1x8x256xbf16>
    %4 = vector.shape_cast %3 : vector<1x8x256xbf16> to vector<8x256xbf16>
    %5 = arith.extf %4 : vector<8x256xbf16> to vector<8x256xf32>
    %c0_5 = arith.constant 0 : index
    %c128 = arith.constant 128 : index
    %6 = vector.load %arg6[%c0_5, %c128] : memref<8x512xf32, #tpu.memory_space<vmem>>, vector<8x256xf32>
    tpu.vector_store %arg6[%c0_5, %c128], %5 {strides = array<i32>} : memref<8x512xf32, #tpu.memory_space<vmem>>, vector<8x256xf32>,
    %7 = tpu.iota {dimensions = array<i32: 1>} : vector<1x256xi32>
    %c16_i32 = arith.constant 16 : i32
    %c0_i32 = arith.constant 0 : i32
    %8 = arith.cmpi eq, %c16_i32, %c0_i32 : i32
    %c1_i32 = arith.constant 1 : i32
    %9 = arith.select %8, %c1_i32, %c16_i32 : i32
    %10 = vector.broadcast %9 : i32 to vector<1x256xi32>
    %11 = arith.remsi %7, %10 : vector<1x256xi32>
    %c0_i32_6 = arith.constant 0 : i32
    %12 = vector.broadcast %c0_i32_6 : i32 to vector<1x256xi32>
    %13 = arith.cmpi ne, %11, %12 : vector<1x256xi32>
    %c0_i32_7 = arith.constant 0 : i32
    %14 = vector.broadcast %c0_i32_7 : i32 to vector<1x256xi32>
    %15 = arith.cmpi slt, %11, %14 : vector<1x256xi32>
    %c0_i32_8 = arith.constant 0 : i32
    %16 = arith.cmpi slt, %9, %c0_i32_8 : i32
    %17 = vector.broadcast %16 : i1 to vector<1x256xi1>
    %18 = vector.broadcast %17 : vector<1x256xi1> to vector<1x256xi1>
    %19 = arith.xori %15, %18 : vector<1x256xi1>
    %20 = arith.andi %19, %13 : vector<1x256xi1>
    %21 = vector.broadcast %9 : i32 to vector<1x256xi32>
    %22 = arith.addi %11, %21 : vector<1x256xi32>
    %23 = arith.select %20, %22, %11 : vector<1x256xi1>, vector<1x256xi32>
    %c0_i32_9 = arith.constant 0 : i32
    %24 = vector.broadcast %c0_i32_9 : i32 to vector<1x256xi32>
    %25 = arith.cmpi eq, %23, %24 : vector<1x256xi32>
    %c15_i32 = arith.constant 15 : i32
    %26 = vector.broadcast %c15_i32 : i32 to vector<1x256xi32>
    %27 = arith.cmpi eq, %23, %26 : vector<1x256xi32>
    %cst_10 = arith.constant 0.000000e+00 : f32
    %28 = vector.broadcast %cst_10 : f32 to vector<8x256xf32>
    %c0_11 = arith.constant 0 : index
    %c111 = arith.constant 111 : index
    %29 = vector.load %arg6[%c0_11, %c111] : memref<8x512xf32, #tpu.memory_space<vmem>>, vector<8x256xf32>
    %cst_12 = arith.constant 0.000000e+00 : f32
    %30 = vector.shape_cast %25 : vector<1x256xi1> to vector<1x256xi1>
    %31 = vector.broadcast %30 : vector<1x256xi1> to vector<8x256xi1>
    %32 = vector.broadcast %cst_12 : f32 to vector<8x256xf32>
    %33 = arith.select %31, %32, %29 : vector<8x256xi1>, vector<8x256xf32>
    %c0_13 = arith.constant 0 : index
    %c0_14 = arith.constant 0 : index
    %c0_15 = arith.constant 0 : index
    %34 = vector.load %arg2[%c0_13, %c0_14, %c0_15] : memref<9x8x8xbf16, #tpu.memory_space<vmem>>, vector<1x8x8xbf16>
    %35 = vector.shape_cast %34 : vector<1x8x8xbf16> to vector<8x8xbf16>
    %36 = arith.truncf %33 : vector<8x256xf32> to vector<8x256xbf16>
    %cst_16 = arith.constant dense<0.000000e+00> : vector<8x256xf32>
    %37 = tpu.matmul %35, %36, %cst_16 {dimension_numbers = #tpu.dot_dimension_numbers<[1], [0], [0], [1], [0, 0, 1, 1], [], []>} : vector<8x8xbf16>, vector<8x256xbf16>, vector<8x256xf32> -> vector<8x256xf32>
    %38 = arith.addf %28, %37 : vector<8x256xf32>
    %c0_17 = arith.constant 0 : index
    %c112 = arith.constant 112 : index
    %39 = vector.load %arg6[%c0_17, %c112] : memref<8x512xf32, #tpu.memory_space<vmem>>, vector<8x256xf32>
    %c1 = arith.constant 1 : index
    %c0_18 = arith.constant 0 : index
    %c0_19 = arith.constant 0 : index
    %40 = vector.load %arg2[%c1, %c0_18, %c0_19] : memref<9x8x8xbf16, #tpu.memory_space<vmem>>, vector<1x8x8xbf16>
    %41 = vector.shape_cast %40 : vector<1x8x8xbf16> to vector<8x8xbf16>
    %42 = arith.truncf %39 : vector<8x256xf32> to vector<8x256xbf16>
    %cst_20 = arith.constant dense<0.000000e+00> : vector<8x256xf32>
    %43 = tpu.matmul %41, %42, %cst_20 {dimension_numbers = #tpu.dot_dimension_numbers<[1], [0], [0], [1], [0, 0, 1, 1], [], []>} : vector<8x8xbf16>, vector<8x256xbf16>, vector<8x256xf32> -> vector<8x256xf32>
    %44 = arith.addf %38, %43 : vector<8x256xf32>
    %c0_21 = arith.constant 0 : index
    %c113 = arith.constant 113 : index
    %45 = vector.load %arg6[%c0_21, %c113] : memref<8x512xf32, #tpu.memory_space<vmem>>, vector<8x256xf32>
    %cst_22 = arith.constant 0.000000e+00 : f32
    %46 = vector.shape_cast %27 : vector<1x256xi1> to vector<1x256xi1>
    %47 = vector.broadcast %46 : vector<1x256xi1> to vector<8x256xi1>
    %48 = vector.broadcast %cst_22 : f32 to vector<8x256xf32>
    %49 = arith.select %47, %48, %45 : vector<8x256xi1>, vector<8x256xf32>
    %c2 = arith.constant 2 : index
    %c0_23 = arith.constant 0 : index
    %c0_24 = arith.constant 0 : index
    %50 = vector.load %arg2[%c2, %c0_23, %c0_24] : memref<9x8x8xbf16, #tpu.memory_space<vmem>>, vector<1x8x8xbf16>
    %51 = vector.shape_cast %50 : vector<1x8x8xbf16> to vector<8x8xbf16>
    %52 = arith.truncf %49 : vector<8x256xf32> to vector<8x256xbf16>
    %cst_25 = arith.constant dense<0.000000e+00> : vector<8x256xf32>
    %53 = tpu.matmul %51, %52, %cst_25 {dimension_numbers = #tpu.dot_dimension_numbers<[1], [0], [0], [1], [0, 0, 1, 1], [], []>} : vector<8x8xbf16>, vector<8x256xbf16>, vector<8x256xf32> -> vector<8x256xf32>
    %54 = arith.addf %44, %53 : vector<8x256xf32>
    %c0_26 = arith.constant 0 : index
    %c127 = arith.constant 127 : index
    %55 = vector.load %arg6[%c0_26, %c127] : memref<8x512xf32, #tpu.memory_space<vmem>>, vector<8x256xf32>
    %cst_27 = arith.constant 0.000000e+00 : f32
    %56 = vector.shape_cast %25 : vector<1x256xi1> to vector<1x256xi1>
    %57 = vector.broadcast %56 : vector<1x256xi1> to vector<8x256xi1>
    %58 = vector.broadcast %cst_27 : f32 to vector<8x256xf32>
    %59 = arith.select %57, %58, %55 : vector<8x256xi1>, vector<8x256xf32>
    %c3 = arith.constant 3 : index
    %c0_28 = arith.constant 0 : index
    %c0_29 = arith.constant 0 : index
    %60 = vector.load %arg2[%c3, %c0_28, %c0_29] : memref<9x8x8xbf16, #tpu.memory_space<vmem>>, vector<1x8x8xbf16>
    %61 = vector.shape_cast %60 : vector<1x8x8xbf16> to vector<8x8xbf16>
    %62 = arith.truncf %59 : vector<8x256xf32> to vector<8x256xbf16>
    %cst_30 = arith.constant dense<0.000000e+00> : vector<8x256xf32>
    %63 = tpu.matmul %61, %62, %cst_30 {dimension_numbers = #tpu.dot_dimension_numbers<[1], [0], [0], [1], [0, 0, 1, 1], [], []>} : vector<8x8xbf16>, vector<8x256xbf16>, vector<8x256xf32> -> vector<8x256xf32>
    %64 = arith.addf %54, %63 : vector<8x256xf32>
    %c0_31 = arith.constant 0 : index
    %c128_32 = arith.constant 128 : index
    %65 = vector.load %arg6[%c0_31, %c128_32] : memref<8x512xf32, #tpu.memory_space<vmem>>, vector<8x256xf32>
    %c4 = arith.constant 4 : index
    %c0_33 = arith.constant 0 : index
    %c0_34 = arith.constant 0 : index
    %66 = vector.load %arg2[%c4, %c0_33, %c0_34] : memref<9x8x8xbf16, #tpu.memory_space<vmem>>, vector<1x8x8xbf16>
    %67 = vector.shape_cast %66 : vector<1x8x8xbf16> to vector<8x8xbf16>
    %68 = arith.truncf %65 : vector<8x256xf32> to vector<8x256xbf16>
    %cst_35 = arith.constant dense<0.000000e+00> : vector<8x256xf32>
    %69 = tpu.matmul %67, %68, %cst_35 {dimension_numbers = #tpu.dot_dimension_numbers<[1], [0], [0], [1], [0, 0, 1, 1], [], []>} : vector<8x8xbf16>, vector<8x256xbf16>, vector<8x256xf32> -> vector<8x256xf32>
    %70 = arith.addf %64, %69 : vector<8x256xf32>
    %c0_36 = arith.constant 0 : index
    %c129 = arith.constant 129 : index
    %71 = vector.load %arg6[%c0_36, %c129] : memref<8x512xf32, #tpu.memory_space<vmem>>, vector<8x256xf32>
    %cst_37 = arith.constant 0.000000e+00 : f32
    %72 = vector.shape_cast %27 : vector<1x256xi1> to vector<1x256xi1>
    %73 = vector.broadcast %72 : vector<1x256xi1> to vector<8x256xi1>
    %74 = vector.broadcast %cst_37 : f32 to vector<8x256xf32>
    %75 = arith.select %73, %74, %71 : vector<8x256xi1>, vector<8x256xf32>
    %c5 = arith.constant 5 : index
    %c0_38 = arith.constant 0 : index
    %c0_39 = arith.constant 0 : index
    %76 = vector.load %arg2[%c5, %c0_38, %c0_39] : memref<9x8x8xbf16, #tpu.memory_space<vmem>>, vector<1x8x8xbf16>
    %77 = vector.shape_cast %76 : vector<1x8x8xbf16> to vector<8x8xbf16>
    %78 = arith.truncf %75 : vector<8x256xf32> to vector<8x256xbf16>
    %cst_40 = arith.constant dense<0.000000e+00> : vector<8x256xf32>
    %79 = tpu.matmul %77, %78, %cst_40 {dimension_numbers = #tpu.dot_dimension_numbers<[1], [0], [0], [1], [0, 0, 1, 1], [], []>} : vector<8x8xbf16>, vector<8x256xbf16>, vector<8x256xf32> -> vector<8x256xf32>
    %80 = arith.addf %70, %79 : vector<8x256xf32>
    %c0_41 = arith.constant 0 : index
    %c143 = arith.constant 143 : index
    %81 = vector.load %arg6[%c0_41, %c143] : memref<8x512xf32, #tpu.memory_space<vmem>>, vector<8x256xf32>
    %cst_42 = arith.constant 0.000000e+00 : f32
    %82 = vector.shape_cast %25 : vector<1x256xi1> to vector<1x256xi1>
    %83 = vector.broadcast %82 : vector<1x256xi1> to vector<8x256xi1>
    %84 = vector.broadcast %cst_42 : f32 to vector<8x256xf32>
    %85 = arith.select %83, %84, %81 : vector<8x256xi1>, vector<8x256xf32>
    %c6 = arith.constant 6 : index
    %c0_43 = arith.constant 0 : index
    %c0_44 = arith.constant 0 : index
    %86 = vector.load %arg2[%c6, %c0_43, %c0_44] : memref<9x8x8xbf16, #tpu.memory_space<vmem>>, vector<1x8x8xbf16>
    %87 = vector.shape_cast %86 : vector<1x8x8xbf16> to vector<8x8xbf16>
    %88 = arith.truncf %85 : vector<8x256xf32> to vector<8x256xbf16>
    %cst_45 = arith.constant dense<0.000000e+00> : vector<8x256xf32>
    %89 = tpu.matmul %87, %88, %cst_45 {dimension_numbers = #tpu.dot_dimension_numbers<[1], [0], [0], [1], [0, 0, 1, 1], [], []>} : vector<8x8xbf16>, vector<8x256xbf16>, vector<8x256xf32> -> vector<8x256xf32>
    %90 = arith.addf %80, %89 : vector<8x256xf32>
    %c0_46 = arith.constant 0 : index
    %c144 = arith.constant 144 : index
    %91 = vector.load %arg6[%c0_46, %c144] : memref<8x512xf32, #tpu.memory_space<vmem>>, vector<8x256xf32>
    %c7 = arith.constant 7 : index
    %c0_47 = arith.constant 0 : index
    %c0_48 = arith.constant 0 : index
    %92 = vector.load %arg2[%c7, %c0_47, %c0_48] : memref<9x8x8xbf16, #tpu.memory_space<vmem>>, vector<1x8x8xbf16>
    %93 = vector.shape_cast %92 : vector<1x8x8xbf16> to vector<8x8xbf16>
    %94 = arith.truncf %91 : vector<8x256xf32> to vector<8x256xbf16>
    %cst_49 = arith.constant dense<0.000000e+00> : vector<8x256xf32>
    %95 = tpu.matmul %93, %94, %cst_49 {dimension_numbers = #tpu.dot_dimension_numbers<[1], [0], [0], [1], [0, 0, 1, 1], [], []>} : vector<8x8xbf16>, vector<8x256xbf16>, vector<8x256xf32> -> vector<8x256xf32>
    %96 = arith.addf %90, %95 : vector<8x256xf32>
    %c0_50 = arith.constant 0 : index
    %c145 = arith.constant 145 : index
    %97 = vector.load %arg6[%c0_50, %c145] : memref<8x512xf32, #tpu.memory_space<vmem>>, vector<8x256xf32>
    %cst_51 = arith.constant 0.000000e+00 : f32
    %98 = vector.shape_cast %27 : vector<1x256xi1> to vector<1x256xi1>
    %99 = vector.broadcast %98 : vector<1x256xi1> to vector<8x256xi1>
    %100 = vector.broadcast %cst_51 : f32 to vector<8x256xf32>
    %101 = arith.select %99, %100, %97 : vector<8x256xi1>, vector<8x256xf32>
    %c8 = arith.constant 8 : index
    %c0_52 = arith.constant 0 : index
    %c0_53 = arith.constant 0 : index
    %102 = vector.load %arg2[%c8, %c0_52, %c0_53] : memref<9x8x8xbf16, #tpu.memory_space<vmem>>, vector<1x8x8xbf16>
    %103 = vector.shape_cast %102 : vector<1x8x8xbf16> to vector<8x8xbf16>
    %104 = arith.truncf %101 : vector<8x256xf32> to vector<8x256xbf16>
    %cst_54 = arith.constant dense<0.000000e+00> : vector<8x256xf32>
    %105 = tpu.matmul %103, %104, %cst_54 {dimension_numbers = #tpu.dot_dimension_numbers<[1], [0], [0], [1], [0, 0, 1, 1], [], []>} : vector<8x8xbf16>, vector<8x256xbf16>, vector<8x256xf32> -> vector<8x256xf32>
    %106 = arith.addf %96, %105 : vector<8x256xf32>
    %c0_55 = arith.constant 0 : index
    %c0_56 = arith.constant 0 : index
    %107 = vector.load %arg3[%c0_55, %c0_56] : memref<8x1xf32, #tpu.memory_space<vmem>>, vector<8x1xf32>
    %108 = vector.broadcast %107 : vector<8x1xf32> to vector<8x256xf32>
    %109 = arith.addf %106, %108 : vector<8x256xf32>
    %110 = arith.truncf %109 : vector<8x256xf32> to vector<8x256xbf16>
    %c0_57 = arith.constant 0 : index
    %c0_58 = arith.constant 0 : index
    %c0_59 = arith.constant 0 : index
    %111 = vector.load %arg4[%c0_57, %c0_58, %c0_59] : memref<1x8x256xbf16, #tpu.memory_space<vmem>>, vector<1x8x256xbf16>
    %112 = vector.shape_cast %111 : vector<1x8x256xbf16> to vector<8x256xbf16>
    %113 = vector.shape_cast %110 : vector<8x256xbf16> to vector<1x8x256xbf16>
    tpu.vector_store %arg4[%c0_57, %c0_58, %c0_59], %113 {strides = array<i32>} : memref<1x8x256xbf16, #tpu.memory_space<vmem>>, vector<1x8x256xbf16>,
    %cst_60 = arith.constant dense<0.000000e+00> : vector<8xf32>
    %114 = vector.multi_reduction <add>, %109, %cst_60 [1] : vector<8x256xf32> to vector<8xf32>
    %115 = vector.shape_cast %114 : vector<8xf32> to vector<8x1xf32>
    %c0_61 = arith.constant 0 : index
    %c0_62 = arith.constant 0 : index
    %c0_63 = arith.constant 0 : index
    %c0_64 = arith.constant 0 : index
    %116 = vector.load %arg5[%c0_61, %c0_62, %c0_63, %c0_64] : memref<1x2x8x1xf32, #tpu.memory_space<vmem>>, vector<1x1x8x1xf32>
    %117 = vector.shape_cast %116 : vector<1x1x8x1xf32> to vector<8x1xf32>
    %118 = vector.shape_cast %115 : vector<8x1xf32> to vector<1x1x8x1xf32>
    tpu.vector_store %arg5[%c0_61, %c0_62, %c0_63, %c0_64], %118 {strides = array<i32>} : memref<1x2x8x1xf32, #tpu.memory_space<vmem>>, vector<1x1x8x1xf32>,
    %119 = arith.mulf %109, %109 : vector<8x256xf32>
    %cst_65 = arith.constant dense<0.000000e+00> : vector<8xf32>
    %120 = vector.multi_reduction <add>, %119, %cst_65 [1] : vector<8x256xf32> to vector<8xf32>
    %121 = vector.shape_cast %120 : vector<8xf32> to vector<8x1xf32>
    %c0_66 = arith.constant 0 : index
    %c1_67 = arith.constant 1 : index
    %c0_68 = arith.constant 0 : index
    %c0_69 = arith.constant 0 : index
    %122 = vector.load %arg5[%c0_66, %c1_67, %c0_68, %c0_69] : memref<1x2x8x1xf32, #tpu.memory_space<vmem>>, vector<1x1x8x1xf32>
    %123 = vector.shape_cast %122 : vector<1x1x8x1xf32> to vector<8x1xf32>
    %124 = vector.shape_cast %121 : vector<8x1xf32> to vector<1x1x8x1xf32>
    tpu.vector_store %arg5[%c0_66, %c1_67, %c0_68, %c0_69], %124 {strides = array<i32>} : memref<1x2x8x1xf32, #tpu.memory_space<vmem>>, vector<1x1x8x1xf32>,
    return
  }
  func.func @transform_0(%arg0: i32) -> (i32, i32, i32) {
    %c0_i32 = arith.constant 0 : i32
    %c0_i32_0 = arith.constant 0 : i32
    %c0_i32_1 = arith.constant 0 : i32
    return %arg0, %c0_i32, %c0_i32_0 : i32, i32, i32
  }
  func.func @transform_1(%arg0: i32) -> (i32, i32, i32) {
    %c0_i32 = arith.constant 0 : i32
    %c0_i32_0 = arith.constant 0 : i32
    %c0_i32_1 = arith.constant 0 : i32
    %c0_i32_2 = arith.constant 0 : i32
    return %c0_i32, %c0_i32_0, %c0_i32_1 : i32, i32, i32
  }
  func.func @transform_2(%arg0: i32) -> (i32, i32) {
    %c0_i32 = arith.constant 0 : i32
    %c0_i32_0 = arith.constant 0 : i32
    %c0_i32_1 = arith.constant 0 : i32
    return %c0_i32, %c0_i32_0 : i32, i32
  }
  func.func @transform_3(%arg0: i32) -> (i32, i32, i32) {
    %c0_i32 = arith.constant 0 : i32
    %c0_i32_0 = arith.constant 0 : i32
    %c0_i32_1 = arith.constant 0 : i32
    return %arg0, %c0_i32, %c0_i32_0 : i32, i32, i32
  }
  func.func @transform_4(%arg0: i32) -> (i32, i32, i32, i32) {
    %c0_i32 = arith.constant 0 : i32
    %c0_i32_0 = arith.constant 0 : i32
    %c0_i32_1 = arith.constant 0 : i32
    %c0_i32_2 = arith.constant 0 : i32
    return %arg0, %c0_i32, %c0_i32_0, %c0_i32_1 : i32, i32, i32, i32
  }
}

module attributes {stable_mosaic.version = 11 : i64} {
  func.func @_bn_relu_kernel(%arg0: i32, %arg1: memref<1x8x256xbf16, #tpu.memory_space<vmem>>, %arg2: memref<8x1xf32, #tpu.memory_space<vmem>>, %arg3: memref<8x1xf32, #tpu.memory_space<vmem>>, %arg4: memref<1x8x256xf32, #tpu.memory_space<vmem>>) attributes {dimension_semantics = [#tpu.dimension_semantics<parallel>], iteration_bounds = array<i64: 2>, scalar_prefetch = 0 : i64, scratch_operands = 0 : i64, tpu.core_type = #tpu.core_type<tc>, window_params = [{transform_indices = @transform_0, window_bounds = array<i64: 1, 8, 256>}, {pipeline_mode = #tpu.pipeline_mode<synchronous>, transform_indices = @transform_1, window_bounds = array<i64: 8, 1>}, {pipeline_mode = #tpu.pipeline_mode<synchronous>, transform_indices = @transform_2, window_bounds = array<i64: 8, 1>}, {transform_indices = @transform_3, window_bounds = array<i64: 1, 8, 256>}]} {
    %c0 = arith.constant 0 : index
    %c0_0 = arith.constant 0 : index
    %c0_1 = arith.constant 0 : index
    %0 = vector.load %arg1[%c0, %c0_0, %c0_1] : memref<1x8x256xbf16, #tpu.memory_space<vmem>>, vector<1x8x256xbf16>
    %1 = vector.shape_cast %0 : vector<1x8x256xbf16> to vector<8x256xbf16>
    %2 = arith.extf %1 : vector<8x256xbf16> to vector<8x256xf32>
    %c0_2 = arith.constant 0 : index
    %c0_3 = arith.constant 0 : index
    %3 = vector.load %arg2[%c0_2, %c0_3] : memref<8x1xf32, #tpu.memory_space<vmem>>, vector<8x1xf32>
    %4 = vector.broadcast %3 : vector<8x1xf32> to vector<8x256xf32>
    %5 = arith.mulf %2, %4 : vector<8x256xf32>
    %c0_4 = arith.constant 0 : index
    %c0_5 = arith.constant 0 : index
    %6 = vector.load %arg3[%c0_4, %c0_5] : memref<8x1xf32, #tpu.memory_space<vmem>>, vector<8x1xf32>
    %7 = vector.broadcast %6 : vector<8x1xf32> to vector<8x256xf32>
    %8 = arith.addf %5, %7 : vector<8x256xf32>
    %cst = arith.constant 0.000000e+00 : f32
    %9 = vector.broadcast %cst : f32 to vector<8x256xf32>
    %10 = arith.maximumf %8, %9 : vector<8x256xf32>
    %c0_6 = arith.constant 0 : index
    %c0_7 = arith.constant 0 : index
    %c0_8 = arith.constant 0 : index
    %11 = vector.load %arg4[%c0_6, %c0_7, %c0_8] : memref<1x8x256xf32, #tpu.memory_space<vmem>>, vector<1x8x256xf32>
    %12 = vector.shape_cast %11 : vector<1x8x256xf32> to vector<8x256xf32>
    %13 = vector.shape_cast %10 : vector<8x256xf32> to vector<1x8x256xf32>
    tpu.vector_store %arg4[%c0_6, %c0_7, %c0_8], %13 {strides = array<i32>} : memref<1x8x256xf32, #tpu.memory_space<vmem>>, vector<1x8x256xf32>,
    return
  }
  func.func @transform_0(%arg0: i32) -> (i32, i32, i32) {
    %c0_i32 = arith.constant 0 : i32
    %c0_i32_0 = arith.constant 0 : i32
    %c0_i32_1 = arith.constant 0 : i32
    return %arg0, %c0_i32, %c0_i32_0 : i32, i32, i32
  }
  func.func @transform_1(%arg0: i32) -> (i32, i32) {
    %c0_i32 = arith.constant 0 : i32
    %c0_i32_0 = arith.constant 0 : i32
    %c0_i32_1 = arith.constant 0 : i32
    return %c0_i32, %c0_i32_0 : i32, i32
  }
  func.func @transform_2(%arg0: i32) -> (i32, i32) {
    %c0_i32 = arith.constant 0 : i32
    %c0_i32_0 = arith.constant 0 : i32
    %c0_i32_1 = arith.constant 0 : i32
    return %c0_i32, %c0_i32_0 : i32, i32
  }
  func.func @transform_3(%arg0: i32) -> (i32, i32, i32) {
    %c0_i32 = arith.constant 0 : i32
    %c0_i32_0 = arith.constant 0 : i32
    %c0_i32_1 = arith.constant 0 : i32
    return %arg0, %c0_i32, %c0_i32_0 : i32, i32, i32
  }
}

module attributes {stable_mosaic.version = 11 : i64} {
  func.func @_bn_relu_kernel(%arg0: i32, %arg1: memref<1x8x256xbf16, #tpu.memory_space<vmem>>, %arg2: memref<8x1xf32, #tpu.memory_space<vmem>>, %arg3: memref<8x1xf32, #tpu.memory_space<vmem>>, %arg4: memref<1x8x256xbf16, #tpu.memory_space<vmem>>) attributes {dimension_semantics = [#tpu.dimension_semantics<parallel>], iteration_bounds = array<i64: 2>, scalar_prefetch = 0 : i64, scratch_operands = 0 : i64, tpu.core_type = #tpu.core_type<tc>, window_params = [{transform_indices = @transform_0, window_bounds = array<i64: 1, 8, 256>}, {pipeline_mode = #tpu.pipeline_mode<synchronous>, transform_indices = @transform_1, window_bounds = array<i64: 8, 1>}, {pipeline_mode = #tpu.pipeline_mode<synchronous>, transform_indices = @transform_2, window_bounds = array<i64: 8, 1>}, {transform_indices = @transform_3, window_bounds = array<i64: 1, 8, 256>}]} {
    %c0 = arith.constant 0 : index
    %c0_0 = arith.constant 0 : index
    %c0_1 = arith.constant 0 : index
    %0 = vector.load %arg1[%c0, %c0_0, %c0_1] : memref<1x8x256xbf16, #tpu.memory_space<vmem>>, vector<1x8x256xbf16>
    %1 = vector.shape_cast %0 : vector<1x8x256xbf16> to vector<8x256xbf16>
    %2 = arith.extf %1 : vector<8x256xbf16> to vector<8x256xf32>
    %c0_2 = arith.constant 0 : index
    %c0_3 = arith.constant 0 : index
    %3 = vector.load %arg2[%c0_2, %c0_3] : memref<8x1xf32, #tpu.memory_space<vmem>>, vector<8x1xf32>
    %4 = vector.broadcast %3 : vector<8x1xf32> to vector<8x256xf32>
    %5 = arith.mulf %2, %4 : vector<8x256xf32>
    %c0_4 = arith.constant 0 : index
    %c0_5 = arith.constant 0 : index
    %6 = vector.load %arg3[%c0_4, %c0_5] : memref<8x1xf32, #tpu.memory_space<vmem>>, vector<8x1xf32>
    %7 = vector.broadcast %6 : vector<8x1xf32> to vector<8x256xf32>
    %8 = arith.addf %5, %7 : vector<8x256xf32>
    %cst = arith.constant 0.000000e+00 : f32
    %9 = vector.broadcast %cst : f32 to vector<8x256xf32>
    %10 = arith.maximumf %8, %9 : vector<8x256xf32>
    %11 = arith.truncf %10 : vector<8x256xf32> to vector<8x256xbf16>
    %c0_6 = arith.constant 0 : index
    %c0_7 = arith.constant 0 : index
    %c0_8 = arith.constant 0 : index
    %12 = vector.load %arg4[%c0_6, %c0_7, %c0_8] : memref<1x8x256xbf16, #tpu.memory_space<vmem>>, vector<1x8x256xbf16>
    %13 = vector.shape_cast %12 : vector<1x8x256xbf16> to vector<8x256xbf16>
    %14 = vector.shape_cast %11 : vector<8x256xbf16> to vector<1x8x256xbf16>
    tpu.vector_store %arg4[%c0_6, %c0_7, %c0_8], %14 {strides = array<i32>} : memref<1x8x256xbf16, #tpu.memory_space<vmem>>, vector<1x8x256xbf16>,
    return
  }
  func.func @transform_0(%arg0: i32) -> (i32, i32, i32) {
    %c0_i32 = arith.constant 0 : i32
    %c0_i32_0 = arith.constant 0 : i32
    %c0_i32_1 = arith.constant 0 : i32
    return %arg0, %c0_i32, %c0_i32_0 : i32, i32, i32
  }
  func.func @transform_1(%arg0: i32) -> (i32, i32) {
    %c0_i32 = arith.constant 0 : i32
    %c0_i32_0 = arith.constant 0 : i32
    %c0_i32_1 = arith.constant 0 : i32
    return %c0_i32, %c0_i32_0 : i32, i32
  }
  func.func @transform_2(%arg0: i32) -> (i32, i32) {
    %c0_i32 = arith.constant 0 : i32
    %c0_i32_0 = arith.constant 0 : i32
    %c0_i32_1 = arith.constant 0 : i32
    return %c0_i32, %c0_i32_0 : i32, i32
  }
  func.func @transform_3(%arg0: i32) -> (i32, i32, i32) {
    %c0_i32 = arith.constant 0 : i32
    %c0_i32_0 = arith.constant 0 : i32
    %c0_i32_1 = arith.constant 0 : i32
    return %arg0, %c0_i32, %c0_i32_0 : i32, i32, i32
  }
}

</mosaic_0001>

<bundles_post_ra>
// kernel: double_conv.7
= control target key start
LH: loop header
LB: loop body
LE: loop exit
PB: predicated region body
PF: predicated region fallthrough
CT: control target
= control target key end

     0   :  { %s301_s12 = smov 0   ;;  %s324_s0 = inlined_call_operand.vmem [shape: bf16[2,8,256], index: 0, kind: input, shape index: {}]   ;;  %s325_s1 = inlined_call_operand.vmem [shape: f32[8,1], index: 1, kind: input, shape index: {}]   ;;  %s326_s2 = inlined_call_operand.vmem [shape: f32[8,1], index: 2, kind: input, shape index: {}]   ;;  %s327_s3 = inlined_call_operand.vmem [shape: f32[2,8,256], index: 3, kind: output, shape index: {}]  }
   0x1 LB: > { %s249_s13 = sadd.s32 4294967295, %s278_s12   ;;  %p253_p0 = scmp.ge.s32.totalorder %s278_s12, 1  ;;  %s278_s12 = sphi %s301_s12, %s13_s12  }
   0x2   : > { %p137_p1 = scmp.lt.s32.totalorder %s278_s12, 3 }
   0x4   : > { %p138_p2 = pnand %p253_p0, %p137_p1 }
   0x5   : > { %v174_v0 = vld [vmem:[%s325_s1] sm:$0xff] (!%p138_p2)  ;;  %v280_v1 = vmov (!%p138_p2), 0   ;;  %p161_p3 = scmp.lt.s32.totalorder (!%p138_p2), %s249_s13, 1 }
   0x6   : > { %141 = sbr.rel (%p138_p2) target bundleno = 144 (0x90), region = 32  ;;  %271 = vset.pattern.permute.xlu0 (!%p138_p2), %v280_v1  ;;  %v182_v2 = vld [vmem:[%s326_s2] sm:$0xff] (!%p138_p2) }
   0x7   : > { %177 = vperm.xlu0 (!%p138_p2), %271, %v174_v0  }
   0xb   : > { %185 = vperm.xlu0 (!%p138_p2), %271, %v182_v2  }
   0xd   : > { %s329_s13 = smov (!%p161_p3, %s249_s13), 1 }
   0xe   : > { %s260_s18 = sshll.u32 %s329_s13, 3  ;;  %s261_s22 = sshll.u32 %s329_s13, 4 }
   0xf   : > { %s165_s21 = scalar_lea.vmem %s324_s0, %s260_s18  ;;  %s170_s25 = scalar_lea.vmem %s327_s3, %s261_s22 }
  0x10   : > { %v171_v3 = vld [vmem:[%s165_s21] sm:$0xff] }
  0x11   : > { %v172_v4 = vunpack.c.l.bf16 %v171_v3  ;;  %v173_v5 = vunpack.c.h.bf16 %v171_v3 }
  0x86   : > { %v178_v6 = vpop.permute.xlu0 %177 }
  0x87   : > { %v180_v7 = vmul.f32 %v178_v6, %v172_v4  ;;  %v181_v8 = vmul.f32 %v178_v6, %v173_v5 }
  0x8a   : > { %v186_v9 = vpop.permute.xlu0 %185 }
  0x8b   : > { %v188_v10 = vadd.f32 %v186_v9, %v180_v7  ;;  %v189_v11 = vadd.f32 %v186_v9, %v181_v8 }
  0x8d   : > { %v190_v12 = vmax.f32 %v188_v10, 0.0  ;;  %v191_v13 = vmax.f32 %v189_v11, 0.0 }
  0x8f   : > { %192 = vst [vmem:[%s170_s25] sm:$0xff] %v190_v12  ;;  %193 = vst [vmem:[%s170_s25 + $0x8] sm:$0xff] %v191_v13 }
  0x90 PF: > { %s13_s12 = sadd.s32 1, %s278_s12  }
  0x91   : > { %p10_p4 = scmp.ge.s32.totalorder %s13_s12, 4  }
  0x93   :  { %12 = sbr.rel (!%p10_p4) target bundleno = 1 (0x1), region = 62 }

// kernel: double_conv.5
= control target key start
LH: loop header
LB: loop body
LE: loop exit
PB: predicated region body
PF: predicated region fallthrough
CT: control target
= control target key end

     0   :  { %s310_s12 = smov 0   ;;  %s333_s0 = inlined_call_operand.vmem [shape: bf16[2,8,256], index: 0, kind: input, shape index: {}, may-alias: {0,3}]   ;;  %s334_s1 = inlined_call_operand.vmem [shape: f32[8,1], index: 1, kind: input, shape index: {}]   ;;  %s335_s2 = inlined_call_operand.vmem [shape: f32[8,1], index: 2, kind: input, shape index: {}]   ;;  %s336_s3 = inlined_call_operand.vmem [shape: bf16[2,8,256], index: 3, kind: output, shape index: {}, may-alias: {0,3}]  }
   0x1 LB: > { %s256_s13 = sadd.s32 4294967295, %s287_s12   ;;  %p260_p0 = scmp.ge.s32.totalorder %s287_s12, 1  ;;  %s287_s12 = sphi %s310_s12, %s13_s12  }
   0x2   : > { %p137_p1 = scmp.lt.s32.totalorder %s287_s12, 3 }
   0x4   : > { %p138_p2 = pnand %p260_p0, %p137_p1 }
   0x5   : > { %v174_v0 = vld [vmem:[%s334_s1] sm:$0xff] (!%p138_p2)  ;;  %v289_v1 = vmov (!%p138_p2), 0   ;;  %p161_p3 = scmp.lt.s32.totalorder (!%p138_p2), %s256_s13, 1 }
   0x6   : > { %141 = sbr.rel (%p138_p2) target bundleno = 146 (0x92), region = 32  ;;  %280 = vset.pattern.permute.xlu0 (!%p138_p2), %v289_v1  ;;  %v182_v2 = vld [vmem:[%s335_s2] sm:$0xff] (!%p138_p2) }
   0x7   : > { %177 = vperm.xlu0 (!%p138_p2), %280, %v174_v0  }
   0xb   : > { %185 = vperm.xlu0 (!%p138_p2), %280, %v182_v2  }
   0xd   : > { %s338_s13 = smov (!%p161_p3, %s256_s13), 1 }
   0xe   : > { %s268_s18 = sshll.u32 %s338_s13, 3 }
   0xf   : > { %s165_s21 = scalar_lea.vmem %s333_s0, %s268_s18  ;;  %s170_s24 = scalar_lea.vmem %s336_s3, %s268_s18 }
  0x10   : > { %v171_v3 = vld [vmem:[%s165_s21] sm:$0xff] }
  0x11   : > { %v172_v4 = vunpack.c.l.bf16 %v171_v3  ;;  %v173_v5 = vunpack.c.h.bf16 %v171_v3 }
  0x86   : > { %v178_v6 = vpop.permute.xlu0 %177 }
  0x87   : > { %v180_v7 = vmul.f32 %v178_v6, %v172_v4  ;;  %v181_v8 = vmul.f32 %v178_v6, %v173_v5 }
  0x8a   : > { %v186_v9 = vpop.permute.xlu0 %185 }
  0x8b   : > { %v188_v10 = vadd.f32 %v186_v9, %v180_v7  ;;  %v189_v11 = vadd.f32 %v186_v9, %v181_v8 }
  0x8d   : > { %v190_v12 = vmax.f32 %v188_v10, 0.0  ;;  %v191_v13 = vmax.f32 %v189_v11, 0.0 }
  0x8f   : > { %v270_v14 = vpack.c.bf16 %v191_v13, %v190_v12 }
  0x91   : > { %200 = vst [vmem:[%s170_s24] sm:$0xff] %v270_v14 }
  0x92 PF: > { %s13_s12 = sadd.s32 1, %s287_s12  }
  0x93   : > { %p10_p4 = scmp.ge.s32.totalorder %s13_s12, 4  }
  0x95   :  { %12 = sbr.rel (!%p10_p4) target bundleno = 1 (0x1), region = 62 }

// kernel: double_conv.4
= control target key start
LH: loop header
LB: loop body
LE: loop exit
PB: predicated region body
PF: predicated region fallthrough
CT: control target
= control target key end

     0   :  { %s1132_s15 = smov 0   ;;  %s1283_s0 = inlined_call_operand.vmem [shape: bf16[2,8,256], index: 0, kind: input, shape index: {}]   ;;  %s1284_s1 = inlined_call_operand.vmem [shape: bf16[9,8,8], index: 1, kind: input, shape index: {}]   ;;  %s1285_s2 = inlined_call_operand.vmem [shape: f32[8,1], index: 2, kind: input, shape index: {}]   ;;  %s1286_s3 = inlined_call_operand.vmem [shape: bf16[2,8,256], index: 3, kind: output, shape index: {0}]   ;;  %s1287_s4 = inlined_call_operand.vmem [shape: f32[2,2,8,1], index: 4, kind: output, shape index: {1}]  }
   0x1 LB: > { %s989_s16 = sadd.s32 4294967295, %s1094_s15   ;;  %p993_p0 = scmp.ge.s32.totalorder %s1094_s15, 1  ;;  %s1094_s15 = sphi %s1132_s15, %s15_s15  }
   0x2   : > { %p165_p1 = scmp.lt.s32.totalorder %s1094_s15, 3 }
   0x4   : > { %p166_p2 = pnand %p993_p0, %p165_p1 }
   0x5   : > { %p196_p3 = scmp.lt.s32.totalorder (!%p166_p2), %s989_s16, 1  ;;  %v1096_v0 = vmov (!%p166_p2), 0.0|0.0   ;;  %s1097_s17 = smov (!%p166_p2), 16   ;;  %v1098_v1 = vmov (!%p166_p2), 0   ;;  %v1103_v8 = vmov (!%p166_p2), 0.0   ;;  %v873_v9 = vld [vmem:[%s1285_s2] sm:$0xff] (!%p166_p2)  ;;  %v219_v10 = vlaneseq (!%p166_p2) }
   0x6   : > { %169 = sbr.rel (%p166_p2) target bundleno = 540 (0x21c), region = 32  ;;  %284 = vrot.lane.b32.xlu0 (!%p166_p2), %v1096_v0, %s1097_s17  ;;  %336 = vmatprep.mubr.bf16.mxu0 (!%p166_p2), %v1098_v1  ;;  %s1099_s22 = smov (!%p166_p2), 17   ;;  %vm290_vm0 = vcmask (!%p166_p2), 130048   ;;  %vm297_vm1 = vcmask (!%p166_p2), 1043456   ;;  %v1000_v21 = vld [vmem:[%s1284_s1 + $0x4] sm:$0xf] (!%p166_p2) }
   0x7   : > { %386 = vmatprep.mubr.bf16.mxu1 (!%p166_p2), %v1098_v1  ;;  %1085 = vset.pattern.permute.xlu0 (!%p166_p2), %v1098_v1  ;;  %s1100_s23 = smov (!%p166_p2), 15   ;;  %s1101_s24 = smov (!%p166_p2), 1   ;;  %v220_v11 = vand.u32 (!%p166_p2), 127, %v219_v10  ;;  %vm293_vm2 = vcmask (!%p166_p2), 64512   ;;  %vm266_vm3 = vcmask (!%p166_p2), 138240   ;;  %vm405_vm6 = vcmask (!%p166_p2), 121856  }
   0x8   : > { %s1102_s25 = smov (!%p166_p2), 127   ;;  %s1104_s26 = smov (!%p166_p2), 113   ;;  %vm474_vm9 = vcmask (!%p166_p2), 7168   ;;  %v273_v46 = vld [vmem:[%s1284_s1] sm:$0xf] (!%p166_p2)  ;;  %vm603_vm10 = vcmask (!%p166_p2), 1039360  }
   0x9   : > { %s1105_s27 = smov (!%p166_p2), 111   ;;  %s1106_s28 = smov (!%p166_p2), 112   ;;  %v221_v13 = vadd.s32 (!%p166_p2), 128, %v220_v11  ;;  %v226_v19 = vand.u32 (!%p166_p2), 15, %v220_v11  ;;  %v1005_v58 = vld [vmem:[%s1284_s1 + $0x8] sm:$0xf] (!%p166_p2) }
   0xa   : > { %vm672_vm11 = vcmask (!%p166_p2), 924672   ;;  %vm810_vm12 = vcmask (!%p166_p2), 908288   ;;  %vm749_vm13 = vcmask (!%p166_p2), 916480   ;;  %v1014_v27 = vld [vmem:[%s1284_s1 + $0x14] sm:$0xf] (!%p166_p2) }
   0xb   : > { %v233_v18 = vand.u32 (!%p166_p2), 15, %v221_v13  ;;  %vm1171_vm5 = vcmp.eq.s32.totalorder (!%p166_p2), %v226_v19, 0  ;;  %vm1185_vm8 = vcmp.eq.s32.totalorder (!%p166_p2), %v226_v19, 15 }
   0xd   : > { %s1297_s16 = smov (!%p196_p3, %s989_s16), 1  ;;  %vm1167_vm4 = vcmp.eq.s32.totalorder %v233_v18, 0  ;;  %vm1177_vm7 = vcmp.eq.s32.totalorder %v233_v18, 15 }
   0xe   : > { %s1030_s18 = sshll.u32 %s1297_s16, 3  ;;  %s1032_s29 = sshll.u32 %s1297_s16, 4 }
   0xf   : > { %s200_s21 = scalar_lea.vmem %s1283_s0, %s1030_s18  ;;  %s210_s6 = scalar_lea.vmem %s1287_s4, %s1032_s29 }
  0x10   : > { %v214_v2 = vld [vmem:[%s200_s21] sm:$0xff] }
  0x11   : > { %v1151_v3 = vcombine.high %v214_v2, %v214_v2  ;;  %v215_v4 = vunpack.c.l.bf16 %v214_v2  ;;  %v1153_v5 = vcombine.low %v214_v2, %v214_v2  ;;  %v216_v6 = vunpack.c.h.bf16 %v214_v2 }
  0x13   : > { %288 = vrot.lane.b32.xlu1 %v1151_v3, %s1097_s17  ;;  %286 = vrot.lane.b32.xlu0 %v1153_v5, %s1097_s17  ;;  %v1070_v7 = vpack.i.bf16 %v216_v6, %v215_v4  ;;  %v543_v60 = vsel %vm297_vm1, %v1153_v5, 0 }
  0x17   : > { %1056 = vrot.lane.b32.xlu1 %v215_v4, %s1099_s22  ;;  %264 = vrot.lane.b32.xlu0 %v216_v6, %s1099_s22 }
  0x1b   : > { %1061 = vrot.lane.b32.xlu1 %v215_v4, %s1100_s23  ;;  %403 = vrot.lane.b32.xlu0 %v216_v6, %s1100_s23 }
  0x1f   : > { %1066 = vrot.lane.b32.xlu1 %v215_v4, %s1101_s24  ;;  %472 = vrot.lane.b32.xlu0 %v216_v6, %s1101_s24 }
  0x23   : > { %1071 = vrot.lane.b32.xlu1 %v1070_v7, %s1102_s25  ;;  %601 = vrot.lane.b32.xlu0 %v1103_v8, %s1102_s25 }
  0x27   : > { %1076 = vrot.lane.b32.xlu1 %v1070_v7, %s1104_s26  ;;  %670 = vrot.lane.b32.xlu0 %v1103_v8, %s1104_s26 }
  0x2b   : > { %1081 = vrot.lane.b32.xlu1 %v1070_v7, %s1105_s27  ;;  %808 = vrot.lane.b32.xlu0 %v1103_v8, %s1105_s27 }
  0x2f   : > { %743 = vrot.lane.b32.xlu1 %v1153_v5, %s1106_s28  ;;  %745 = vrot.lane.b32.xlu0 %v1151_v3, %s1106_s28 }
  0x33   : > { %747 = vrot.lane.b32.xlu1 %v1096_v0, %s1106_s28  ;;  %876 = vperm.xlu0 %1085, %v873_v9   ;;  %v1008_v9 = vld [vmem:[%s1284_s1 + $0xc] sm:$0xf]  ;;  %s205_s28 = scalar_lea.vmem %s1286_s3, %s1030_s18 }
  0x78   : > { %v285_v12 = vpop.permute.xlu0 %284 }
  0x85   : > { %v289_v14 = vpop.permute.xlu1 %288  ;;  %v287_v15 = vpop.permute.xlu0 %286 }
  0x86   : > { %v292_v16 = vsel %vm290_vm0, %v287_v15, %v289_v14  ;;  %v291_v17 = vsel %vm290_vm0, %v285_v12, %v287_v15 }
  0x87   : > { %1001 = vmatprep.subr.msk.bf16.mxu0 %vm297_vm1, %v292_v16  ;;  %v299_v20 = vsel %vm297_vm1, %v291_v17, 0 }
  0x88   : > { %305 = vmatpush1.bf16.msra.mxu0 %v299_v20  ;;  %v1011_v20 = vld [vmem:[%s1284_s1 + $0x10] sm:$0xf] }
  0x89   : > { %v1057_v22 = vpop.permute.xlu1 %1056  ;;  %v265_v23 = vpop.permute.xlu0 %264 }
  0x8a   : > { %v1059_v24 = vunpack.i.h.bf16 %v1057_v22  ;;  %v1058_v25 = vunpack.i.l.bf16 %v1057_v22 }
  0x8b   : > { %1002 = vmatmul.mubr.msk.bf16.vlgmr.msra.gmra.mrb[0].mxu0 %vm293_vm2, %v1000_v21 }
  0x8c   : > { %v268_v28 = vsel %vm266_vm3, %v1059_v24, %v265_v23  ;;  %v267_v29 = vsel %vm266_vm3, %v1058_v25, %v1059_v24  ;;  %457 = vmatprep.mubr.bf16.mxu0 %v1098_v1 }
  0x8d   : > { %v1062_v30 = vpop.permute.xlu1 %1061  ;;  %v404_v32 = vpop.permute.xlu0 %403  ;;  %v272_v33 = vsel %vm1167_vm4, 0.0, %v268_v28  ;;  %v271_v34 = vsel %vm1171_vm5, 0.0, %v267_v29 }
  0x8e   : > { %v1064_v36 = vunpack.i.h.bf16 %v1062_v30  ;;  %v1063_v37 = vunpack.i.l.bf16 %v1062_v30  ;;  %v275_v38 = vpack.c.bf16 %v272_v33, %v272_v33  ;;  %v274_v39 = vpack.c.bf16 %v271_v34, %v271_v34 }
  0x90   : > { %v406_v40 = vsel %vm405_vm6, %v1063_v37, %v1064_v36  ;;  %v407_v41 = vsel %vm405_vm6, %v1064_v36, %v404_v32  ;;  %1003 = vmatprep.subr.msk.bf16.mxu1 %vm297_vm1, %v275_v38  ;;  %v349_v42 = vsel %vm297_vm1, %v274_v39, 0 }
  0x91   : > { %v411_v43 = vsel %vm1177_vm7, 0.0, %v407_v41  ;;  %v1067_v44 = vpop.permute.xlu1 %1066  ;;  %355 = vmatpush1.bf16.msra.mxu1 %v349_v42  ;;  %v473_v45 = vpop.permute.xlu0 %472  ;;  %v410_v47 = vsel %vm1185_vm8, 0.0, %v406_v40  ;;  %v1017_v40 = vld [vmem:[%s1284_s1 + $0x18] sm:$0xf]  ;;  %v1020_v42 = vld [vmem:[%s1284_s1 + $0x1c] sm:$0xf] }
  0x92   : > { %v415_v48 = vpack.c.bf16 %v411_v43, %v411_v43  ;;  %v1069_v49 = vunpack.i.h.bf16 %v1067_v44  ;;  %v1068_v50 = vunpack.i.l.bf16 %v1067_v44  ;;  %v414_v51 = vpack.c.bf16 %v410_v47, %v410_v47  ;;  %v1023_v43 = vld [vmem:[%s1284_s1 + $0x20] sm:$0xf] }
  0x94   : > { %v476_v52 = vsel %vm474_vm9, %v1069_v49, %v473_v45  ;;  %1004 = vmatmul.mubr.msk.bf16.vlgmr.msra.gmra.mrb[0].mxu1 %vm293_vm2, %v273_v46  ;;  %1006 = vmatprep.subr.msk.bf16.mxu0 %vm297_vm1, %v415_v48  ;;  %v420_v53 = vsel %vm297_vm1, %v414_v51, 0  ;;  %v475_v54 = vsel %vm474_vm9, %v1068_v50, %v1069_v49 }
  0x95   : > { %v480_v55 = vsel %vm1167_vm4, 0.0, %v476_v52  ;;  %v1072_v56 = vpop.permute.xlu1 %1071  ;;  %426 = vmatpush1.bf16.msra.mxu0 %v420_v53  ;;  %v602_v57 = vpop.permute.xlu0 %601  ;;  %v479_v59 = vsel %vm1171_vm5, 0.0, %v475_v54  ;;  %526 = vmatprep.mubr.bf16.mxu1 %v1098_v1 }
  0x96   : > { %v484_v61 = vpack.c.bf16 %v480_v55, %v480_v55  ;;  %v1074_v62 = vunpack.i.h.bf16 %v1072_v56  ;;  %v1073_v63 = vunpack.i.l.bf16 %v1072_v56  ;;  %v483_v0 = vpack.c.bf16 %v479_v59, %v479_v59  ;;  %1012 = vmatprep.subr.msk.bf16.mxu0 %vm297_vm1, %v1151_v3 }
  0x98   : > { %v604_v2 = vsel %vm603_vm10, %v1073_v63, %v1074_v62  ;;  %v605_v4 = vsel %vm603_vm10, %v1074_v62, %v602_v57  ;;  %1007 = vmatmul.mubr.msk.bf16.vlgmr.msra.gmra.mrb[4].mxu0 %vm293_vm2, %v1005_v58  ;;  %1009 = vmatprep.subr.msk.bf16.mxu1 %vm297_vm1, %v484_v61  ;;  %v489_v6 = vsel %vm297_vm1, %v483_v0, 0 }
  0x99   : > { %v609_v7 = vsel %vm1177_vm7, 0.0, %v605_v4  ;;  %v1077_v8 = vpop.permute.xlu1 %1076  ;;  %495 = vmatpush1.bf16.msra.mxu1 %v489_v6  ;;  %v671_v5 = vpop.permute.xlu0 %670  ;;  %549 = vmatpush1.bf16.msra.mxu0 %v543_v60  ;;  %v608_v3 = vsel %vm1185_vm8, 0.0, %v604_v2 }
  0x9a   : > { %v613_v10 = vpack.c.bf16 %v609_v7, %v609_v7  ;;  %v1079_v11 = vunpack.i.h.bf16 %v1077_v8  ;;  %v1078_v12 = vunpack.i.l.bf16 %v1077_v8  ;;  %580 = vmatprep.mubr.bf16.mxu0 %v1098_v1  ;;  %v612_v13 = vpack.c.bf16 %v608_v3, %v608_v3 }
  0x9c   : > { %v673_v14 = vsel %vm672_vm11, %v1078_v12, %v1079_v11  ;;  %v674_v15 = vsel %vm672_vm11, %v1079_v11, %v671_v5  ;;  %1010 = vmatmul.mubr.msk.bf16.vlgmr.msra.gmra.mrb[4].mxu1 %vm293_vm2, %v1008_v9  ;;  %1015 = vmatprep.subr.msk.bf16.mxu1 %vm297_vm1, %v613_v10  ;;  %v618_v16 = vsel %vm297_vm1, %v612_v13, 0 }
  0x9d   : > { %v678_v17 = vsel %vm1167_vm4, 0.0, %v674_v15  ;;  %v1082_v18 = vpop.permute.xlu1 %1081  ;;  %v809_v19 = vpop.permute.xlu0 %808  ;;  %624 = vmatpush1.bf16.msra.mxu1 %v618_v16  ;;  %655 = vmatprep.mubr.bf16.mxu1 %v1098_v1  ;;  %v677_v21 = vsel %vm1171_vm5, 0.0, %v673_v14 }
  0x9e   : > { %v682_v22 = vpack.c.bf16 %v678_v17, %v678_v17  ;;  %v1084_v23 = vunpack.i.h.bf16 %v1082_v18  ;;  %v1083_v24 = vunpack.i.l.bf16 %v1082_v18  ;;  %v681_v25 = vpack.c.bf16 %v677_v21, %v677_v21 }
  0xa0   : > { %v811_v26 = vsel %vm810_vm12, %v1083_v24, %v1084_v23  ;;  %v812_v28 = vsel %vm810_vm12, %v1084_v23, %v809_v19  ;;  %1013 = vmatmul.mubr.msk.bf16.vlgmr.msra.gmra.mrb[8].mxu0 %vm293_vm2, %v1011_v20  ;;  %1018 = vmatprep.subr.msk.bf16.mxu0 %vm297_vm1, %v682_v22  ;;  %v687_v29 = vsel %vm297_vm1, %v681_v25, 0 }
  0xa1   : > { %v816_v30 = vsel %vm1177_vm7, 0.0, %v812_v28  ;;  %v744_v32 = vpop.permute.xlu1 %743  ;;  %v746_v33 = vpop.permute.xlu0 %745  ;;  %693 = vmatpush1.bf16.msra.mxu0 %v687_v29  ;;  %724 = vmatprep.mubr.bf16.mxu0 %v1098_v1  ;;  %v815_v34 = vsel %vm1185_vm8, 0.0, %v811_v26 }
  0xa2   : > { %v820_v36 = vpack.c.bf16 %v816_v30, %v816_v30  ;;  %v750_v37 = vsel %vm749_vm13, %v744_v32, %v746_v33  ;;  %v819_v38 = vpack.c.bf16 %v815_v34, %v815_v34 }
  0xa3   : > { %v756_v31 = vsel %vm297_vm1, %v750_v37, 0 }
  0xa4   : > { %1016 = vmatmul.mubr.msk.bf16.vlgmr.msra.gmra.mrb[8].mxu1 %vm293_vm2, %v1014_v27  ;;  %1024 = vmatprep.subr.msk.bf16.mxu0 %vm297_vm1, %v820_v36  ;;  %v825_v41 = vsel %vm297_vm1, %v819_v38, 0 }
  0xa5   : > { %v748_v39 = vpop.permute.xlu1 %747  ;;  %793 = vmatprep.mubr.bf16.mxu1 %v1098_v1 }
  0xa6   : > { %v751_v35 = vsel %vm749_vm13, %v746_v33, %v748_v39 }
  0xa7   : > { %1021 = vmatprep.subr.msk.bf16.mxu1 %vm297_vm1, %v751_v35 }
  0xa8   : > { %1019 = vmatmul.mubr.msk.bf16.vlgmr.msra.gmra.mrb[12].mxu0 %vm293_vm2, %v1017_v40  ;;  %762 = vmatpush1.bf16.msra.mxu1 %v756_v31 }
  0xa9   : > { %831 = vmatpush1.bf16.msra.mxu0 %v825_v41  ;;  %862 = vmatprep.mubr.bf16.mxu0 %v1098_v1 }
  0xac   : > { %1022 = vmatmul.mubr.msk.bf16.vlgmr.msra.gmra.mrb[12].mxu1 %vm293_vm2, %v1020_v42 }
  0xb0   : > { %1025 = vmatmul.mubr.msk.bf16.vlgmr.msra.gmra.mrb[16].mxu0 %vm293_vm2, %v1023_v43 }
  0xb2   : > { %v877_v28 = vpop.permute.xlu0 %876 }
 0x15e   : > { %v338_v44 = vpop.f32.mrb[0].mxu0 }
 0x15f   : > { %v340_v45 = vpop.f32.mrb[1].mxu0 }
 0x160   : > { %v342_v46 = vpop.f32.mrb[2].mxu0 }
 0x161   : > { %v343_v47 = vpop.f32.mrb[3].mxu0 }
 0x167   : > { %v388_v48 = vpop.f32.mrb[0].mxu1 }
 0x168   : > { %v389_v49 = vadd.f32 %v388_v48, %v338_v44  ;;  %v390_v50 = vpop.f32.mrb[1].mxu1 }
 0x169   : > { %v391_v51 = vadd.f32 %v390_v50, %v340_v45  ;;  %v392_v52 = vpop.f32.mrb[2].mxu1 }
 0x16a   : > { %v393_v53 = vpop.f32.mrb[3].mxu1 }
 0x16b   : > { %v459_v54 = vpop.f32.mrb[4].mxu0 }
 0x16c   : > { %v466_v1 = vadd.f32 %v459_v54, %v389_v49  ;;  %v461_v55 = vpop.f32.mrb[5].mxu0 }
 0x16d   : > { %v467_v56 = vadd.f32 %v461_v55, %v391_v51  ;;  %v463_v57 = vpop.f32.mrb[6].mxu0 }
 0x16e   : > { %v464_v58 = vpop.f32.mrb[7].mxu0 }
 0x16f   : > { %v528_v59 = vpop.f32.mrb[4].mxu1 }
 0x170   : > { %v535_v60 = vadd.f32 %v528_v59, %v466_v1  ;;  %v530_v61 = vpop.f32.mrb[5].mxu1 }
 0x171   : > { %v536_v62 = vadd.f32 %v530_v61, %v467_v56  ;;  %v532_v63 = vpop.f32.mrb[6].mxu1 }
 0x172   : > { %v533_v0 = vpop.f32.mrb[7].mxu1 }
 0x173   : > { %v582_v2 = vpop.f32.mrb[8].mxu0 }
 0x174   : > { %v589_v4 = vadd.f32 %v582_v2, %v535_v60  ;;  %v584_v6 = vpop.f32.mrb[9].mxu0 }
 0x175   : > { %v590_v7 = vadd.f32 %v584_v6, %v536_v62  ;;  %v586_v8 = vpop.f32.mrb[10].mxu0 }
 0x176   : > { %v587_v5 = vpop.f32.mrb[11].mxu0 }
 0x177   : > { %v657_v9 = vpop.f32.mrb[8].mxu1 }
 0x178   : > { %v664_v3 = vadd.f32 %v657_v9, %v589_v4  ;;  %v659_v10 = vpop.f32.mrb[9].mxu1 }
 0x179   : > { %v665_v11 = vadd.f32 %v659_v10, %v590_v7  ;;  %v661_v12 = vpop.f32.mrb[10].mxu1 }
 0x17a   : > { %v662_v13 = vpop.f32.mrb[11].mxu1 }
 0x17b   : > { %v726_v14 = vpop.f32.mrb[12].mxu0 }
 0x17c   : > { %v733_v15 = vadd.f32 %v726_v14, %v664_v3  ;;  %v728_v16 = vpop.f32.mrb[13].mxu0 }
 0x17d   : > { %v734_v17 = vadd.f32 %v728_v16, %v665_v11  ;;  %v730_v18 = vpop.f32.mrb[14].mxu0 }
 0x17e   : > { %v731_v19 = vpop.f32.mrb[15].mxu0 }
 0x17f   : > { %v795_v20 = vpop.f32.mrb[12].mxu1 }
 0x180   : > { %v802_v21 = vadd.f32 %v795_v20, %v733_v15  ;;  %v797_v22 = vpop.f32.mrb[13].mxu1 }
 0x181   : > { %v803_v23 = vadd.f32 %v797_v22, %v734_v17  ;;  %v799_v24 = vpop.f32.mrb[14].mxu1 }
 0x182   : > { %v800_v25 = vpop.f32.mrb[15].mxu1 }
 0x183   : > { %v864_v26 = vpop.f32.mrb[16].mxu0 }
 0x184   : > { %v871_v29 = vadd.f32 %v864_v26, %v802_v21  ;;  %v866_v30 = vpop.f32.mrb[17].mxu0 }
 0x185   : > { %v872_v32 = vadd.f32 %v866_v30, %v803_v23  ;;  %v868_v33 = vpop.f32.mrb[18].mxu0 }
 0x186   : > { %v879_v27 = vadd.f32 %v877_v28, %v871_v29  ;;  %v869_v34 = vpop.f32.mrb[19].mxu0 }
 0x187   : > { %v880_v36 = vadd.f32 %v877_v28, %v872_v32 }
 0x188   : > { %v894_v37 = vmul.f32 %v879_v27, %v879_v27 }
 0x189   : > { %v1033_v38 = vpack.c.bf16 %v880_v36, %v879_v27  ;;  %v890_v31 = vadd.f32 %v880_v36, %v879_v27  ;;  %v895_v39 = vmul.f32 %v880_v36, %v880_v36 }
 0x18b   : > { %889 = vst [vmem:[%s205_s28] sm:$0xff] %v1033_v38  ;;  %891 = vadd.xlane.f32.xlu1 %v890_v31  ;;  %v896_v40 = vadd.f32 %v895_v39, %v894_v37 }
 0x18d   : > { %897 = vadd.xlane.f32.xlu0 %v896_v40 }
 0x218   : > { %v892_v35 = vpop.xlane.xlu1 %891 }
 0x219   : > { %893 = vst.msk [vmem:[%s210_s6] sm:$0xff] %vm474_vm9, %v892_v35 }
 0x21a   : > { %v898_v41 = vpop.xlane.xlu0 %897 }
 0x21b   : > { %1027 = vst.msk [vmem:[%s210_s6 + $0x8] sm:$0xff] %vm474_vm9, %v898_v41 }
 0x21c PF: > { %s15_s15 = sadd.s32 1, %s1094_s15  }
 0x21d   : > { %p12_p4 = scmp.ge.s32.totalorder %s15_s15, 4  }
 0x21f   :  { %14 = sbr.rel (!%p12_p4) target bundleno = 1 (0x1), region = 83 }

</bundles_post_ra>
